<compile_context>
chip_gen: v5e
topology: v5e:2x2
jax: 0.10.0
libtpu: 0.0.40
codegen_flags: <defaults>
</compile_context>

<pallas_src>
import functools

import numpy as np

import jax
import jax.numpy as jnp
from jax import lax
from jax.experimental import pallas as pl
from jax.experimental.pallas import tpu as pltpu


def _round_up(x: int, m: int) -> int:
    return ((x + m - 1) // m) * m


# ---------------------------------------------------------------------------
# Kernel: windowed-irfft matmul + register-staggered overlap-add + envelope.
#
#   grid = (B, num_T_tiles); the frame-tile axis is the reduction axis
#   ("arbitrary"): the (rows, hop_pad) output block stays resident in VMEM.
#
#   x_ref      : (F, T_tile)        spec tile, native layout ([re; im] rows)
#   w_ref      : (F, R*hop_pad)     windowed irfft basis, hop-segment layout
#   invenv_ref : (rows, hop_pad)    1 / window envelope (f32, 0 in pad cols)
#   y_ref      : (rows, hop_pad)    resident accumulator / output (f32)
# ---------------------------------------------------------------------------
def _istft_kernel(x_ref, w_ref, invenv_ref, y_ref, *,
                  hop_pad: int, R: int, T_tile: int, scratch_rows: int):
    tt = pl.program_id(1)
    cols = R * hop_pad

    @pl.when(tt == 0)
    def _init():
        y_ref[...] = jnp.zeros_like(y_ref)

    # Windowed irfft for this tile of frames in one MXU pass.  The spec tile
    # is fed transposed (contraction over the sublane / frequency axis), so the
    # wrapper never transposes it in HBM.
    frames = lax.dot_general(
        x_ref[...], w_ref[...],
        dimension_numbers=(((0,), (0,)), ((), ())),
        preferred_element_type=jnp.float32)           # (T_tile, R*hop_pad) f32

    # Stagger the R hop segments in registers: frame t's segment s belongs to
    # output row (t + s).  Column slices are 128-lane aligned; the sublane
    # shifts ride the XLU.  Then do ONE 8-aligned RMW into the resident
    # accumulator instead of R overlapping, misaligned ones.
    pad_top = _round_up(R - 1, 8)
    pad_bot = scratch_rows - T_tile
    parts = []
    if pad_top:
        parts.append(jnp.zeros((pad_top, cols), jnp.float32))
    parts.append(frames)
    if pad_bot:
        parts.append(jnp.zeros((pad_bot, cols), jnp.float32))
    fz = jnp.concatenate(parts, axis=0) if len(parts) > 1 else frames

    acc = fz[pad_top:pad_top + scratch_rows, 0:hop_pad]
    for s in range(1, R):
        acc = acc + fz[pad_top - s:pad_top - s + scratch_rows,
                       s * hop_pad:(s + 1) * hop_pad]

    row0 = pl.multiple_of(tt * T_tile, 8)
    y_ref[pl.ds(row0, scratch_rows), :] += acc

    @pl.when(tt == pl.num_programs(1) - 1)
    def _finalize():
        y_ref[...] = y_ref[...] * invenv_ref[...]


class ISTFTPallas:
    """Pallas TPU implementation of ISTFT with padding='same'."""

    def __init__(self, n_fft: int, hop_length: int, win_length: int,
                 padding: str = "same", compute_dtype=jnp.float32,
                 max_frames_per_tile: int = 512):
        if padding not in ("center", "same"):
            raise ValueError("Padding must be 'center' or 'same'.")
        if padding == "center":
            # TODO(synk): 'center' path (torch.istft delegation) not implemented.
            raise NotImplementedError("Only padding='same' is implemented.")
        assert win_length == n_fft, "This implementation assumes win_length == n_fft."
        assert hop_length <= win_length, "hop_length must be <= win_length."
        assert max_frames_per_tile % 128 == 0

        self.n_fft = n_fft
        self.hop_length = hop_length
        self.win_length = win_length
        self.compute_dtype = compute_dtype
        self.max_frames_per_tile = max_frames_per_tile

        self.R = -(-n_fft // hop_length)             # ceil(n_fft / hop)
        self.hop_pad = _round_up(hop_length, 128)    # lane-dense OLA columns

        # hann window (torch.hann_window default: periodic=True), host-side.
        n = np.arange(win_length, dtype=np.float64)
        self.window = 0.5 * (1.0 - np.cos(2.0 * np.pi * n / win_length))

        # irfft basis (norm='backward'), window folded in, re/im rows stacked,
        # columns in the lane-aligned hop-segment layout: segment s lives in
        # columns [s*hop_pad, s*hop_pad + hop); all padding columns are zero.
        nf = n_fft // 2 + 1
        self.n_freq = nf
        F = 2 * nf
        k = np.arange(nf, dtype=np.float64)[:, None]
        t = np.arange(n_fft, dtype=np.float64)[None, :]
        ang = 2.0 * np.pi * k * t / n_fft
        scale = np.full((nf, 1), 2.0 / n_fft)
        scale[0, 0] = 1.0 / n_fft
        if n_fft % 2 == 0:
            scale[-1, 0] = 1.0 / n_fft               # Nyquist bin
        basis = np.concatenate([scale * np.cos(ang), -scale * np.sin(ang)],
                               axis=0) * self.window[None, :]       # (F, n_fft)
        cols = self.R * self.hop_pad
        w = np.zeros((F, cols), np.float32)
        for s in range(self.R):
            seg = basis[:, s * hop_length:min((s + 1) * hop_length, n_fft)]
            w[:, s * self.hop_pad: s * self.hop_pad + seg.shape[1]] = seg
        self.basis = jnp.asarray(w, dtype=compute_dtype)            # (F, cols)

        # Per-core VMEM capacity for plan-aware scoped limits.
        vmem_cap = 64 * 1024 * 1024                  # safe lower bound (v7x)
        try:
            vmem_cap = int(getattr(pltpu.get_tpu_info(),
                                   "vmem_capacity_bytes", vmem_cap))
        except Exception:
            pass
        self._vmem_cap = vmem_cap

        self._plans = {}
        self._single_buffer = None   # resolved lazily (pl.Buffered(1) probe)

    # Per-T plan (tiling, envelope, NOLA, VMEM budget); host-side, cached.
    def _plan(self, T: int):
        p = self._plans.get(T)
        if p is not None:
            return p
        hop, win, R = self.hop_length, self.win_length, self.R

        cap = self.max_frames_per_tile
        if T <= cap:
            T_tile, num_tiles = _round_up(T, 8), 1
        else:
            T_tile, num_tiles = cap, -(-T // cap)    # cap % 128 == 0
        T_pad = T_tile * num_tiles
        scratch_rows = _round_up(T_tile + R - 1, 8)
        rows = (num_tiles - 1) * T_tile + scratch_rows

        L = (T - 1) * hop + win
        pad = (win - hop) // 2

        # Window envelope: NOLA check + reciprocal (no device<->host sync).
        env = np.zeros((rows * hop,), np.float64)
        wsq = self.window ** 2
        for t in range(T):
            env[t * hop: t * hop + win] += wsq
        assert np.all(env[pad:L - pad] > 1e-11), "NOLA check failed"
        inv = np.zeros((rows, self.hop_pad), np.float32)
        inv[:, :hop] = (1.0 / np.maximum(env, 1e-11)).reshape(rows, hop)

        # Plan-aware scoped-VMEM limit (generous upper bound incl. buffers).
        F = 2 * self.n_freq
        cols = R * self.hop_pad
        isz = np.dtype(self.compute_dtype).itemsize
        need = (2 * F * T_tile * isz                 # spec tile, double buf
                + 2 * F * cols * isz                 # basis (<= 2 buffers)
                + 2 * rows * self.hop_pad * 4        # inv_env (<= 2 buffers)
                + 2 * rows * self.hop_pad * 4        # resident output block
                + 2 * (T_tile + 2 * scratch_rows) * cols * 4)   # kernel temps
        vmem_limit = int(min(self._vmem_cap * 9 // 10,
                             max(32 * 1024 * 1024, 2 * need)))
        # TODO(synk): if `need` exceeds ~0.9*VMEM (very long T on v7x), a
        #             rows-tiled accumulator with an (R-1)-row halo is needed.

        p = dict(T_tile=T_tile, num_tiles=num_tiles, T_pad=T_pad,
                 scratch_rows=scratch_rows, rows=rows, L=L, pad=pad,
                 vmem_limit=vmem_limit, inv_env=jnp.asarray(inv))
        self._plans[T] = p
        return p

    def _pallas_call(self, x, p, single_buffer: bool):
        B = x.shape[0]
        F = 2 * self.n_freq
        cols = self.R * self.hop_pad
        # Grid-invariant operands: request a single buffer (halves residency).
        const_kw = dict(pipeline_mode=pl.Buffered(1)) if single_buffer else {}

        kernel = functools.partial(
            _istft_kernel, hop_pad=self.hop_pad, R=self.R,
            T_tile=p["T_tile"], scratch_rows=p["scratch_rows"])

        return pl.pallas_call(
            kernel,
            out_shape=jax.ShapeDtypeStruct((B, p["rows"], self.hop_pad),
                                           jnp.float32),
            grid=(B, p["num_tiles"]),
            in_specs=[
                pl.BlockSpec((None, F, p["T_tile"]), lambda b, t: (b, 0, t)),
                pl.BlockSpec((F, cols), lambda b, t: (0, 0), **const_kw),
                pl.BlockSpec((p["rows"], self.hop_pad), lambda b, t: (0, 0),
                             **const_kw),
            ],
            out_specs=pl.BlockSpec((None, p["rows"], self.hop_pad),
                                   lambda b, t: (b, 0, 0)),
            compiler_params=pltpu.CompilerParams(
                dimension_semantics=("parallel", "arbitrary"),
                vmem_limit_bytes=p["vmem_limit"]),
        )(x, self.basis, p["inv_env"])

    def _run(self, x, p):
        if self._single_buffer is None:
            try:
                y2 = self._pallas_call(x, p, single_buffer=True)
                jax.block_until_ready(y2)
                self._single_buffer = True
                return y2
            except Exception:
                # Older builds may reject pipeline_mode=pl.Buffered(1);
                # fall back to default double buffering.
                self._single_buffer = False
        return self._pallas_call(x, p, self._single_buffer)

    def __call__(self, spec_re: jax.Array, spec_im: jax.Array = None) -> jax.Array:
        if spec_im is None:                          # complex input, like torch
            spec_re, spec_im = jnp.real(spec_re), jnp.imag(spec_re)
        B, Nf, T = spec_re.shape
        assert Nf == self.n_freq, (Nf, self.n_freq)
        hop = self.hop_length
        p = self._plan(T)

        # Native (B, 2*Nf, T) layout: no HBM transpose, only re/im concat
        # (+ zero-pad of the frame axis up to the tile grid).
        x = jnp.concatenate([spec_re, spec_im], axis=1).astype(self.compute_dtype)
        if p["T_pad"] != T:
            x = jnp.pad(x, ((0, 0), (0, 0), (0, p["T_pad"] - T)))

        y2 = self._run(x, p)                         # (B, rows, hop_pad) f32

        if self.hop_pad != hop:                      # trim lane padding
            y2 = y2[:, :, :hop]
        y = y2.reshape(B, p["rows"] * hop)
        return y[:, p["pad"]: p["L"] - p["pad"]]


# ---------------------------------------------------------------------------
# Pure-JAX reference (mirrors the PyTorch forward, padding='same')
# ---------------------------------------------------------------------------
def istft_ref(spec_re, spec_im, n_fft, hop, win_length, window):
    spec = spec_re.astype(jnp.complex64) + 1j * spec_im.astype(jnp.complex64)
    ifft = jnp.fft.irfft(spec, n=n_fft, axis=1).astype(jnp.float32)  # (B,n_fft,T)
    ifft = ifft * window[None, :, None]
    B, _, T = spec.shape
    L = (T - 1) * hop + win_length
    idx = (np.arange(T)[:, None] * hop + np.arange(win_length)[None, :]).reshape(-1)
    vals = jnp.transpose(ifft, (0, 2, 1)).reshape(B, -1)             # (B, T*win)
    y = jnp.zeros((B, L), jnp.float32).at[:, idx].add(vals)
    env = jnp.zeros((L,), jnp.float32).at[idx].add(
        jnp.tile(window.astype(jnp.float32) ** 2, T))
    pad = (win_length - hop) // 2
    return y[:, pad:L - pad] / env[pad:L - pad]


if __name__ == "__main__":
    # Small config consistent with the module: n_fft=16, hop=4, win=16.
    n_fft, hop, win_length = 16, 4, 16
    Nf = n_fft // 2 + 1

    key = jax.random.PRNGKey(0)
    k1, k2, k3, k4 = jax.random.split(key, 4)

    # --- B=2, T=8 frames: single-tile path (f32 operands, default) --------
    B, T = 2, 8
    spec_re = jax.random.normal(k1, (B, Nf, T), dtype=jnp.float32)
    spec_im = jax.random.normal(k2, (B, Nf, T), dtype=jnp.float32)

    istft = ISTFTPallas(n_fft, hop, win_length, padding="same")
    y = istft(spec_re, spec_im)
    jax.block_until_ready(y)

    window = jnp.asarray(istft.window, dtype=jnp.float32)
    y_ref = istft_ref(spec_re, spec_im, n_fft, hop, win_length, window)
    assert y.shape == y_ref.shape, (y.shape, y_ref.shape)
    assert jnp.allclose(y, y_ref, atol=2e-2, rtol=2e-2), \
        float(jnp.max(jnp.abs(y - y_ref)))

    # --- multi-tile path (resident accumulator across the frame grid axis) --
    B2, T2 = 1, 200
    spec_re2 = jax.random.normal(k3, (B2, Nf, T2), dtype=jnp.float32)
    spec_im2 = jax.random.normal(k4, (B2, Nf, T2), dtype=jnp.float32)
    istft_mt = ISTFTPallas(n_fft, hop, win_length, padding="same",
                           max_frames_per_tile=128)
    y_mt = istft_mt(spec_re2, spec_im2)
    jax.block_until_ready(y_mt)
    y_mt_ref = istft_ref(spec_re2, spec_im2, n_fft, hop, win_length, window)
    assert y_mt.shape == y_mt_ref.shape, (y_mt.shape, y_mt_ref.shape)
    assert jnp.allclose(y_mt, y_mt_ref, atol=2e-2, rtol=2e-2), \
        float(jnp.max(jnp.abs(y_mt - y_mt_ref)))

    # --- bf16 MXU-operand variant of the same kernel ------------------------
    istft_bf16 = ISTFTPallas(n_fft, hop, win_length, padding="same",
                             compute_dtype=jnp.bfloat16)
    y_bf16 = istft_bf16(spec_re, spec_im)
    jax.block_until_ready(y_bf16)
    assert jnp.allclose(y_bf16, y_ref, atol=5e-2, rtol=5e-2), \
        float(jnp.max(jnp.abs(y_bf16 - y_ref)))

    print("KERNEL_OK")
</pallas_src>

<mosaic_0001>
module attributes {stable_mosaic.version = 11 : i64} {
  func.func @_istft_kernel(%arg0: i32, %arg1: i32, %arg2: memref<1x18x8xf32, #tpu.memory_space<vmem>>, %arg3: memref<18x512xf32, #tpu.memory_space<vmem>>, %arg4: memref<16x128xf32, #tpu.memory_space<vmem>>, %arg5: memref<1x16x128xf32, #tpu.memory_space<vmem>>) attributes {dimension_semantics = [#tpu.dimension_semantics<parallel>, #tpu.dimension_semantics<arbitrary>], iteration_bounds = array<i64: 2, 1>, scalar_prefetch = 0 : i64, scratch_operands = 0 : i64, tpu.core_type = #tpu.core_type<tc>, window_params = [{transform_indices = @transform_0, window_bounds = array<i64: 1, 18, 8>}, {pipeline_mode = #tpu.pipeline_mode<synchronous>, transform_indices = @transform_1, window_bounds = array<i64: 18, 512>}, {pipeline_mode = #tpu.pipeline_mode<synchronous>, transform_indices = @transform_2, window_bounds = array<i64: 16, 128>}, {transform_indices = @transform_3, window_bounds = array<i64: 1, 16, 128>}]} {
    %c0_i32 = arith.constant 0 : i32
    %0 = arith.cmpi eq, %arg1, %c0_i32 : i32
    %1 = arith.extui %0 : i1 to i32
    %c0_i32_0 = arith.constant 0 : i32
    %2 = arith.cmpi ne, %1, %c0_i32_0 : i32
    scf.if %2 {
      %cst_13 = arith.constant 0.000000e+00 : f32
      %30 = vector.broadcast %cst_13 : f32 to vector<16x128xf32>
      %c0_14 = arith.constant 0 : index
      %c0_15 = arith.constant 0 : index
      %c0_16 = arith.constant 0 : index
      %31 = vector.load %arg5[%c0_14, %c0_15, %c0_16] : memref<1x16x128xf32, #tpu.memory_space<vmem>>, vector<1x16x128xf32>
      %32 = vector.shape_cast %31 : vector<1x16x128xf32> to vector<16x128xf32>
      %33 = vector.shape_cast %30 : vector<16x128xf32> to vector<1x16x128xf32>
      tpu.vector_store %arg5[%c0_14, %c0_15, %c0_16], %33 {strides = array<i32>} : memref<1x16x128xf32, #tpu.memory_space<vmem>>, vector<1x16x128xf32>,
    } else {
    }
    %c0 = arith.constant 0 : index
    %c0_1 = arith.constant 0 : index
    %c0_2 = arith.constant 0 : index
    %3 = vector.load %arg2[%c0, %c0_1, %c0_2] : memref<1x18x8xf32, #tpu.memory_space<vmem>>, vector<1x18x8xf32>
    %4 = vector.shape_cast %3 : vector<1x18x8xf32> to vector<18x8xf32>
    %c0_3 = arith.constant 0 : index
    %c0_4 = arith.constant 0 : index
    %5 = vector.load %arg3[%c0_3, %c0_4] : memref<18x512xf32, #tpu.memory_space<vmem>>, vector<18x512xf32>
    %cst = arith.constant dense<0.000000e+00> : vector<8x512xf32>
    %6 = tpu.matmul %4, %5, %cst {dimension_numbers = #tpu.dot_dimension_numbers<[0], [0], [1], [1], [0, 1, 1, 1], [], []>} : vector<18x8xf32>, vector<18x512xf32>, vector<8x512xf32> -> vector<8x512xf32>
    %cst_5 = arith.constant 0.000000e+00 : f32
    %7 = vector.broadcast %cst_5 : f32 to vector<8x512xf32>
    %cst_6 = arith.constant 0.000000e+00 : f32
    %8 = vector.broadcast %cst_6 : f32 to vector<8x512xf32>
    %9 = tpu.concatenate %7, %6, %8 in 0 : vector<8x512xf32>, vector<8x512xf32>, vector<8x512xf32> -> vector<24x512xf32>
    %10 = vector.extract_strided_slice %9 {offsets = [8, 0], sizes = [16, 128], strides = [1, 1]} : vector<24x512xf32> to vector<16x128xf32>
    %11 = vector.extract_strided_slice %9 {offsets = [7, 128], sizes = [16, 128], strides = [1, 1]} : vector<24x512xf32> to vector<16x128xf32>
    %12 = arith.addf %10, %11 : vector<16x128xf32>
    %13 = vector.extract_strided_slice %9 {offsets = [6, 256], sizes = [16, 128], strides = [1, 1]} : vector<24x512xf32> to vector<16x128xf32>
    %14 = arith.addf %12, %13 : vector<16x128xf32>
    %15 = vector.extract_strided_slice %9 {offsets = [5, 384], sizes = [16, 128], strides = [1, 1]} : vector<24x512xf32> to vector<16x128xf32>
    %16 = arith.addf %14, %15 : vector<16x128xf32>
    %c8_i32 = arith.constant 8 : i32
    %17 = arith.muli %arg1, %c8_i32 : i32
    %18 = tpu.assume_multiple %17, 8 : i32
    %c0_7 = arith.constant 0 : index
    %19 = arith.index_cast %18 : i32 to index
    %c0_8 = arith.constant 0 : index
    %20 = vector.load %arg5[%c0_7, %19, %c0_8] : memref<1x16x128xf32, #tpu.memory_space<vmem>>, vector<1x16x128xf32>
    %21 = vector.shape_cast %20 : vector<1x16x128xf32> to vector<16x128xf32>
    %22 = arith.addf %21, %16 : vector<16x128xf32>
    %c0_9 = arith.constant 0 : index
    %23 = arith.index_cast %18 : i32 to index
    %c0_10 = arith.constant 0 : index
    %24 = vector.load %arg5[%c0_9, %23, %c0_10] : memref<1x16x128xf32, #tpu.memory_space<vmem>>, vector<1x16x128xf32>
    %25 = vector.shape_cast %24 : vector<1x16x128xf32> to vector<16x128xf32>
    %26 = vector.shape_cast %22 : vector<16x128xf32> to vector<1x16x128xf32>
    tpu.vector_store %arg5[%c0_9, %23, %c0_10], %26 {strides = array<i32>} : memref<1x16x128xf32, #tpu.memory_space<vmem>>, vector<1x16x128xf32>,
    %c0_i32_11 = arith.constant 0 : i32
    %27 = arith.cmpi eq, %arg1, %c0_i32_11 : i32
    %28 = arith.extui %27 : i1 to i32
    %c0_i32_12 = arith.constant 0 : i32
    %29 = arith.cmpi ne, %28, %c0_i32_12 : i32
    scf.if %29 {
      %c0_13 = arith.constant 0 : index
      %c0_14 = arith.constant 0 : index
      %c0_15 = arith.constant 0 : index
      %30 = vector.load %arg5[%c0_13, %c0_14, %c0_15] : memref<1x16x128xf32, #tpu.memory_space<vmem>>, vector<1x16x128xf32>
      %31 = vector.shape_cast %30 : vector<1x16x128xf32> to vector<16x128xf32>
      %c0_16 = arith.constant 0 : index
      %c0_17 = arith.constant 0 : index
      %32 = vector.load %arg4[%c0_16, %c0_17] : memref<16x128xf32, #tpu.memory_space<vmem>>, vector<16x128xf32>
      %33 = arith.mulf %31, %32 : vector<16x128xf32>
      %c0_18 = arith.constant 0 : index
      %c0_19 = arith.constant 0 : index
      %c0_20 = arith.constant 0 : index
      %34 = vector.load %arg5[%c0_18, %c0_19, %c0_20] : memref<1x16x128xf32, #tpu.memory_space<vmem>>, vector<1x16x128xf32>
      %35 = vector.shape_cast %34 : vector<1x16x128xf32> to vector<16x128xf32>
      %36 = vector.shape_cast %33 : vector<16x128xf32> to vector<1x16x128xf32>
      tpu.vector_store %arg5[%c0_18, %c0_19, %c0_20], %36 {strides = array<i32>} : memref<1x16x128xf32, #tpu.memory_space<vmem>>, vector<1x16x128xf32>,
    } else {
    }
    return
  }
  func.func @transform_0(%arg0: i32, %arg1: i32) -> (i32, i32, i32) {
    %c0_i32 = arith.constant 0 : i32
    %c0_i32_0 = arith.constant 0 : i32
    return %arg0, %c0_i32, %arg1 : i32, i32, i32
  }
  func.func @transform_1(%arg0: i32, %arg1: i32) -> (i32, i32) {
    %c0_i32 = arith.constant 0 : i32
    %c0_i32_0 = arith.constant 0 : i32
    %c0_i32_1 = arith.constant 0 : i32
    return %c0_i32, %c0_i32_0 : i32, i32
  }
  func.func @transform_2(%arg0: i32, %arg1: i32) -> (i32, i32) {
    %c0_i32 = arith.constant 0 : i32
    %c0_i32_0 = arith.constant 0 : i32
    %c0_i32_1 = arith.constant 0 : i32
    return %c0_i32, %c0_i32_0 : i32, i32
  }
  func.func @transform_3(%arg0: i32, %arg1: i32) -> (i32, i32, i32) {
    %c0_i32 = arith.constant 0 : i32
    %c0_i32_0 = arith.constant 0 : i32
    %c0_i32_1 = arith.constant 0 : i32
    return %arg0, %c0_i32, %c0_i32_0 : i32, i32, i32
  }
}

module attributes {stable_mosaic.version = 11 : i64} {
  func.func @_istft_kernel(%arg0: i32, %arg1: i32, %arg2: memref<1x18x8xf32, #tpu.memory_space<vmem>>, %arg3: memref<18x512xf32, #tpu.memory_space<vmem>>, %arg4: memref<16x128xf32, #tpu.memory_space<vmem>>, %arg5: memref<1x16x128xf32, #tpu.memory_space<vmem>>) attributes {dimension_semantics = [#tpu.dimension_semantics<parallel>, #tpu.dimension_semantics<arbitrary>], iteration_bounds = array<i64: 2, 1>, scalar_prefetch = 0 : i64, scratch_operands = 0 : i64, tpu.core_type = #tpu.core_type<tc>, window_params = [{transform_indices = @transform_0, window_bounds = array<i64: 1, 18, 8>}, {pipeline_mode = #tpu.pipeline_mode<synchronous>, transform_indices = @transform_1, window_bounds = array<i64: 18, 512>}, {pipeline_mode = #tpu.pipeline_mode<synchronous>, transform_indices = @transform_2, window_bounds = array<i64: 16, 128>}, {transform_indices = @transform_3, window_bounds = array<i64: 1, 16, 128>}]} {
    %c0_i32 = arith.constant 0 : i32
    %0 = arith.cmpi eq, %arg1, %c0_i32 : i32
    %1 = arith.extui %0 : i1 to i32
    %c0_i32_0 = arith.constant 0 : i32
    %2 = arith.cmpi ne, %1, %c0_i32_0 : i32
    scf.if %2 {
      %cst_13 = arith.constant 0.000000e+00 : f32
      %30 = vector.broadcast %cst_13 : f32 to vector<16x128xf32>
      %c0_14 = arith.constant 0 : index
      %c0_15 = arith.constant 0 : index
      %c0_16 = arith.constant 0 : index
      %31 = vector.load %arg5[%c0_14, %c0_15, %c0_16] : memref<1x16x128xf32, #tpu.memory_space<vmem>>, vector<1x16x128xf32>
      %32 = vector.shape_cast %31 : vector<1x16x128xf32> to vector<16x128xf32>
      %33 = vector.shape_cast %30 : vector<16x128xf32> to vector<1x16x128xf32>
      tpu.vector_store %arg5[%c0_14, %c0_15, %c0_16], %33 {strides = array<i32>} : memref<1x16x128xf32, #tpu.memory_space<vmem>>, vector<1x16x128xf32>,
    } else {
    }
    %c0 = arith.constant 0 : index
    %c0_1 = arith.constant 0 : index
    %c0_2 = arith.constant 0 : index
    %3 = vector.load %arg2[%c0, %c0_1, %c0_2] : memref<1x18x8xf32, #tpu.memory_space<vmem>>, vector<1x18x8xf32>
    %4 = vector.shape_cast %3 : vector<1x18x8xf32> to vector<18x8xf32>
    %c0_3 = arith.constant 0 : index
    %c0_4 = arith.constant 0 : index
    %5 = vector.load %arg3[%c0_3, %c0_4] : memref<18x512xf32, #tpu.memory_space<vmem>>, vector<18x512xf32>
    %cst = arith.constant dense<0.000000e+00> : vector<8x512xf32>
    %6 = tpu.matmul %4, %5, %cst {dimension_numbers = #tpu.dot_dimension_numbers<[0], [0], [1], [1], [0, 1, 1, 1], [], []>} : vector<18x8xf32>, vector<18x512xf32>, vector<8x512xf32> -> vector<8x512xf32>
    %cst_5 = arith.constant 0.000000e+00 : f32
    %7 = vector.broadcast %cst_5 : f32 to vector<8x512xf32>
    %cst_6 = arith.constant 0.000000e+00 : f32
    %8 = vector.broadcast %cst_6 : f32 to vector<8x512xf32>
    %9 = tpu.concatenate %7, %6, %8 in 0 : vector<8x512xf32>, vector<8x512xf32>, vector<8x512xf32> -> vector<24x512xf32>
    %10 = vector.extract_strided_slice %9 {offsets = [8, 0], sizes = [16, 128], strides = [1, 1]} : vector<24x512xf32> to vector<16x128xf32>
    %11 = vector.extract_strided_slice %9 {offsets = [7, 128], sizes = [16, 128], strides = [1, 1]} : vector<24x512xf32> to vector<16x128xf32>
    %12 = arith.addf %10, %11 : vector<16x128xf32>
    %13 = vector.extract_strided_slice %9 {offsets = [6, 256], sizes = [16, 128], strides = [1, 1]} : vector<24x512xf32> to vector<16x128xf32>
    %14 = arith.addf %12, %13 : vector<16x128xf32>
    %15 = vector.extract_strided_slice %9 {offsets = [5, 384], sizes = [16, 128], strides = [1, 1]} : vector<24x512xf32> to vector<16x128xf32>
    %16 = arith.addf %14, %15 : vector<16x128xf32>
    %c8_i32 = arith.constant 8 : i32
    %17 = arith.muli %arg1, %c8_i32 : i32
    %18 = tpu.assume_multiple %17, 8 : i32
    %c0_7 = arith.constant 0 : index
    %19 = arith.index_cast %18 : i32 to index
    %c0_8 = arith.constant 0 : index
    %20 = vector.load %arg5[%c0_7, %19, %c0_8] : memref<1x16x128xf32, #tpu.memory_space<vmem>>, vector<1x16x128xf32>
    %21 = vector.shape_cast %20 : vector<1x16x128xf32> to vector<16x128xf32>
    %22 = arith.addf %21, %16 : vector<16x128xf32>
    %c0_9 = arith.constant 0 : index
    %23 = arith.index_cast %18 : i32 to index
    %c0_10 = arith.constant 0 : index
    %24 = vector.load %arg5[%c0_9, %23, %c0_10] : memref<1x16x128xf32, #tpu.memory_space<vmem>>, vector<1x16x128xf32>
    %25 = vector.shape_cast %24 : vector<1x16x128xf32> to vector<16x128xf32>
    %26 = vector.shape_cast %22 : vector<16x128xf32> to vector<1x16x128xf32>
    tpu.vector_store %arg5[%c0_9, %23, %c0_10], %26 {strides = array<i32>} : memref<1x16x128xf32, #tpu.memory_space<vmem>>, vector<1x16x128xf32>,
    %c0_i32_11 = arith.constant 0 : i32
    %27 = arith.cmpi eq, %arg1, %c0_i32_11 : i32
    %28 = arith.extui %27 : i1 to i32
    %c0_i32_12 = arith.constant 0 : i32
    %29 = arith.cmpi ne, %28, %c0_i32_12 : i32
    scf.if %29 {
      %c0_13 = arith.constant 0 : index
      %c0_14 = arith.constant 0 : index
      %c0_15 = arith.constant 0 : index
      %30 = vector.load %arg5[%c0_13, %c0_14, %c0_15] : memref<1x16x128xf32, #tpu.memory_space<vmem>>, vector<1x16x128xf32>
      %31 = vector.shape_cast %30 : vector<1x16x128xf32> to vector<16x128xf32>
      %c0_16 = arith.constant 0 : index
      %c0_17 = arith.constant 0 : index
      %32 = vector.load %arg4[%c0_16, %c0_17] : memref<16x128xf32, #tpu.memory_space<vmem>>, vector<16x128xf32>
      %33 = arith.mulf %31, %32 : vector<16x128xf32>
      %c0_18 = arith.constant 0 : index
      %c0_19 = arith.constant 0 : index
      %c0_20 = arith.constant 0 : index
      %34 = vector.load %arg5[%c0_18, %c0_19, %c0_20] : memref<1x16x128xf32, #tpu.memory_space<vmem>>, vector<1x16x128xf32>
      %35 = vector.shape_cast %34 : vector<1x16x128xf32> to vector<16x128xf32>
      %36 = vector.shape_cast %33 : vector<16x128xf32> to vector<1x16x128xf32>
      tpu.vector_store %arg5[%c0_18, %c0_19, %c0_20], %36 {strides = array<i32>} : memref<1x16x128xf32, #tpu.memory_space<vmem>>, vector<1x16x128xf32>,
    } else {
    }
    return
  }
  func.func @transform_0(%arg0: i32, %arg1: i32) -> (i32, i32, i32) {
    %c0_i32 = arith.constant 0 : i32
    %c0_i32_0 = arith.constant 0 : i32
    return %arg0, %c0_i32, %arg1 : i32, i32, i32
  }
  func.func @transform_1(%arg0: i32, %arg1: i32) -> (i32, i32) {
    %c0_i32 = arith.constant 0 : i32
    %c0_i32_0 = arith.constant 0 : i32
    %c0_i32_1 = arith.constant 0 : i32
    return %c0_i32, %c0_i32_0 : i32, i32
  }
  func.func @transform_2(%arg0: i32, %arg1: i32) -> (i32, i32) {
    %c0_i32 = arith.constant 0 : i32
    %c0_i32_0 = arith.constant 0 : i32
    %c0_i32_1 = arith.constant 0 : i32
    return %c0_i32, %c0_i32_0 : i32, i32
  }
  func.func @transform_3(%arg0: i32, %arg1: i32) -> (i32, i32, i32) {
    %c0_i32 = arith.constant 0 : i32
    %c0_i32_0 = arith.constant 0 : i32
    %c0_i32_1 = arith.constant 0 : i32
    return %arg0, %c0_i32, %c0_i32_0 : i32, i32, i32
  }
}

</mosaic_0001>

<bundles_post_ra>
// kernel: tpu_custom_call.1
= control target key start
LH: loop header
LB: loop body
LE: loop exit
PB: predicated region body
PF: predicated region fallthrough
CT: control target
= control target key end

     0   :  { %8 = vsyncpa [#allocation3], 0  ;;  %s865_s0 = inlined_call_operand.vmem [shape: f32[2,18,8], index: 0, kind: input, shape index: {}]   ;;  %s866_s1 = inlined_call_operand.hbm [shape: f32[18,512], index: 1, kind: input, shape index: {}]   ;;  %s867_s2 = inlined_call_operand.vmem [shape: f32[16,128], index: 2, kind: input, shape index: {}]   ;;  %s868_s3 = inlined_call_operand.hbm [shape: f32[2,16,128], index: 3, kind: output, shape index: {}]  }
   0x1   :  { %9 = vsyncpa [#allocation4], 0 }
   0x2   :  { %11 = vsyncpa [#allocation4 + $0x1], 0  ;;  %s749_s12 = smov 0   ;;  %s751_s13 = smov 0  }
   0x3   :  { %s753_s14 = smov 0   ;;  %s755_s15 = smov 0  }
   0x4   :  { %s757_s16 = smov 0   ;;  %s759_s17 = smov 0  }
   0x5 LB: > { %s514_s18 = sadd.s32 4294967295, %s721_s17   ;;  %s515_s19 = sadd.s32 4294967294, %s721_s17   ;;  %s721_s17 = sphi %s759_s17, %s17_s17   ;;  %s717_s16 = sphi %s757_s16, %s875_s16   ;;  %s713_s15 = sphi %s755_s15, %s874_s15   ;;  %s709_s14 = sphi %s753_s14, %s873_s14   ;;  %s705_s13 = sphi %s751_s13, %s872_s13   ;;  %s701_s12 = sphi %s749_s12, %s871_s12  }
   0x6   : > { %s29_s20 = sadd.s32 1, %s717_s16  ;;  %s106_s21 = sadd.s32 1, %s709_s14 }
   0x7   : > { %p31_p0 = scmp.ge.s32.totalorder %s29_s20, 2  ;;  %p116_p1 = scmp.ne.s32.totalorder %s709_s14, %s705_s13 }
   0x8   : > { %p117_p2 = scmp.eq.s32.totalorder %s514_s18, 1  ;;  %p122_p3 = scmp.ne.s32.totalorder %s705_s13, %s701_s12 }
   0x9   : > { %s877_s20 = smov (%p31_p0, %s29_s20), 0  ;;  %p123_p5 = scmp.eq.s32.totalorder %s515_s19, 1 }
   0xa   : > { %p789_p4 = por %p117_p2, %p116_p1  ;;  %s103_s23 = ssub.s32 %s717_s16, %s877_s20 }
   0xb   : > { %p516_p6 = scmp.ge.s32.totalorder %s721_s17, 1  ;;  %p104_p7 = scmp.eq.s32.totalorder %s103_s23, 0 }
   0xc   : > { %p796_p8 = por %p123_p5, %p122_p3  ;;  %p130_p9 = scmp.lt.s32.totalorder %s721_s17, 3 }
   0xd   : > { %s802_s25 = scalar_select %p104_p7, %s709_s14, %s106_s21  }
   0xe   : > { %p131_p10 = pnand %p516_p6, %p130_p9  ;;  %p552_p11 = scmp.eq.s32.totalorder %s514_s18, 0 }
   0xf   : > { %s141_s28 = sshll.u32 %s866_s1, 4  ;;  %s723_s29 = smov [#allocation2]   ;;  %s142_s28 = int_to_ptr.hbm [resolvable:$true] %s141_s28 }
  0x10   : > { %p544_p12 = pneg %p131_p10  ;;  %s143_s30 = sshll.u32 %s723_s29, 4  ;;  %s144_s30 = int_to_ptr.vmem [resolvable:$true] %s143_s30 }
  0x11   : > { %s724_s4 = smov 512   ;;  %s725_s5 = smov 32  }
  0x12   : > { %p545_p13 = pnand %p552_p11, %p544_p12  ;;  %173 = sbr.rel (%p131_p10) target bundleno = 344 (0x158), region = 32 }
  0x14   : > { %547 = dma.hbm_to_vmem [thread:$0]  (!%p545_p13), %s142_s28, 1536, %s144_s30, [#allocation3], %s724_s4, %s724_s4, %s725_s5  }
  0x17   : > { %692 = dma.done.wait (%p552_p11), [#allocation3], 1536  }
  0x18   : > { %694 = vsyncadd (%p552_p11), [#allocation3], 4294965760  ;;  %p201_p0 = scmp.lt.s32.totalorder %s713_s15, 1  ;;  %vm266_vm0 = vcmask 1041408   ;;  %v226_v1 = vld [vmem:[#allocation2 + $0x40] sm:$0x3] }
  0x19   : > { %v227_v2 = vld [vmem:[#allocation2 + $0x48] sm:$0x3]  ;;  %v222_v3 = vld [vmem:[#allocation2 + $0x20] sm:$0xff]  ;;  %523 = vmatpush.msk.msra.mxu0 %vm266_vm0, %v226_v1  ;;  %v228_v4 = vld [vmem:[#allocation2 + $0x50] sm:$0x3]  ;;  %vm262_vm1 = vcmask 146432  }
  0x1a   : > { %s202_s6 = scalar_select %p201_p0, %s713_s15, 1  ;;  %525 = vmatpush.msk.msra.mxu1 %vm266_vm0, %v227_v2  ;;  %v229_v5 = vld [vmem:[#allocation2 + $0x58] sm:$0x3]  ;;  %v223_v6 = vld [vmem:[#allocation2 + $0x28] sm:$0xff]  ;;  %527 = vmatpush.msk.msra.mxu2 %vm266_vm0, %v228_v4  ;;  %v224_v7 = vld [vmem:[#allocation2 + $0x30] sm:$0xff]  ;;  %v726_v17 = vmov 0.0  }
  0x1b   : > { %529 = vmatpush.msk.msra.mxu3 %vm266_vm0, %v229_v5  ;;  %v225_v8 = vld [vmem:[#allocation2 + $0x38] sm:$0xff]  ;;  %v218_v9 = vld [vmem:[#allocation2] sm:$0xff]  ;;  %293 = vmatpush.msra.mxu0 %v222_v3  ;;  %v219_v10 = vld [vmem:[#allocation2 + $0x8] sm:$0xff]  ;;  %v362_v18 = vrot.slane %v726_v17, 7  ;;  %vm361_vm2 = vcmask 1040384   ;;  %s198_s11 = sand.u32 1, %s705_s13  }
  0x1c   : > { %s537_s7 = smul.u32 24, %s202_s6  ;;  %313 = vmatpush.msra.mxu1 %v223_v6  ;;  %v220_v11 = vld [vmem:[#allocation2 + $0x10] sm:$0xff]  ;;  %v221_v12 = vld [vmem:[#allocation2 + $0x18] sm:$0xff]  ;;  %333 = vmatpush.msra.mxu2 %v224_v7  ;;  %v371_v21 = vrot.slane %v726_v17, 6  ;;  %s521_s18 = sshll.u32 %s198_s11, 4  ;;  %v381_v26 = vrot.slane %v726_v17, 5 }
  0x1d   : > { %353 = vmatpush.msra.mxu3 %v225_v8  ;;  %294 = vmatpush.msra.mxu0 %v218_v9  ;;  %s536_s19 = sshll.u32 %s713_s15, 4  ;;  %vm380_vm3 = vcmask 1042432   ;;  %v402_v38 = vld [vmem:[%s867_s2] sm:$0xff]  ;;  %v403_v39 = vld [vmem:[%s867_s2 + $0x8] sm:$0xff]  ;;  %s200_s30 = scalar_lea.vmem [#allocation5], %s521_s18 }
  0x1e   : > { %s208_s10 = scalar_lea.vmem %s865_s0, %s537_s7  ;;  %314 = vmatpush.msra.mxu1 %v219_v10  ;;  %334 = vmatpush.msra.mxu2 %v220_v11  ;;  %s420_s26 = scalar_lea.hbm %s868_s3, %s536_s19 }
  0x1f   : > { %v215_v0 = vld [vmem:[%s208_s10] sm:$0xff]  ;;  %v216_v13 = vld [vmem:[%s208_s10 + $0x8] sm:$0xff]  ;;  %354 = vmatpush.msra.mxu3 %v221_v12  ;;  %v217_v14 = vld [vmem:[%s208_s10 + $0x10] sm:$0x3]  ;;  %s421_s4 = sshll.u32 %s200_s30, 4  ;;  %s423_s5 = sshll.u32 %s420_s26, 4  ;;  %s422_s4 = int_to_ptr.vmem [resolvable:$true] %s421_s4  ;;  %s424_s5 = int_to_ptr.hbm [resolvable:$true] %s423_s5 }
  0x20   : > { %230 = vxpose.xlu0.b32.start [1/3] (short) (narrow) %v215_v0, 8  ;;  %s409_s6 = scalar_lea.sflag [#allocation4], %s198_s11  ;;  %s653_s7 = sshra.s32 %s424_s5, 4  ;;  %s654_s7 = int_to_ptr.hbm [resolvable:$true] %s653_s7 }
  0x21   : > { %s655_s8 = scalar_lea.hbm %s654_s7, 16  ;;  %s659_s18 = scalar_lea.hbm %s868_s3, 32 }
  0x22   : > { %p656_p1 = scmp.ne.s32.totalorder %s654_s7, %s655_s8  ;;  %p660_p5 = scmp.lt.s32.totalorder %s654_s7, %s868_s3 }
  0x23   : > { %p661_p6 = scmp.lt.s32.totalorder %s659_s18, %s655_s8 }
  0x24   : > { %p657_p2 = pnand %p656_p1, %p789_p4 }
  0x25   : > { %p662_p7 = por %p661_p6, %p660_p5 }
  0x26   : > { %p658_p3 = pneg %p657_p2 }
  0x28   : > { %231 = vxpose.xlu0.b32.cont [2/3] (short) (narrow) %v216_v13, 8  ;;  %p663_p9 = pnand %p662_p7, %p658_p3 }
  0x30   : > { %232 = vxpose.xlu0.b32.end [3/3] (short) (narrow) %v217_v14, 8 }
  0xc4   : > { %v246_v15 = vpop.trf.xlu0 }
  0xc5   : > { %524 = vmatmul.msk.f32.vlgmr.msra.gmra.mxu0 %vm262_vm1, %v246_v15  ;;  %526 = vmatmul.msk.f32.vlgmr.msra.gmra.mxu1 %vm262_vm1, %v246_v15 }
  0xc6   : > { %528 = vmatmul.msk.f32.vlgmr.msra.gmra.mxu2 %vm262_vm1, %v246_v15  ;;  %530 = vmatmul.msk.f32.vlgmr.msra.gmra.mxu3 %vm262_vm1, %v246_v15 }
 0x142   : > { %v316_v16 = vpop.f32.mrf.mxu1  ;;  %v296_v24 = vpop.f32.mrf.mxu0 }
 0x143   : > { %v363_v19 = vrot.slane %v316_v16, 7 }
 0x145   : > { %v364_v20 = vsel %vm361_vm2, %v362_v18, %v363_v19  ;;  %v365_v29 = vsel %vm361_vm2, %v363_v19, %v362_v18 }
 0x146   : > { %v368_v28 = vadd.f32 %v364_v20, %v296_v24 }
 0x149   : > { %v336_v22 = vpop.f32.mrf.mxu2  ;;  %v356_v23 = vpop.f32.mrf.mxu3 }
 0x14a   : > { %v372_v25 = vrot.slane %v336_v22, 6  ;;  %v382_v27 = vrot.slane %v356_v23, 5 }
 0x14c   : > { %v373_v30 = vsel %vm266_vm0, %v371_v21, %v372_v25  ;;  %v374_v31 = vsel %vm266_vm0, %v372_v25, %v371_v21  ;;  %v383_v34 = vsel %vm380_vm3, %v381_v26, %v382_v27  ;;  %v384_v35 = vsel %vm380_vm3, %v382_v27, %v381_v26 }
 0x14d   : > { %v377_v32 = vadd.f32 %v373_v30, %v368_v28  ;;  %v378_v33 = vadd.f32 %v374_v31, %v365_v29 }
 0x14f   : > { %v387_v36 = vadd.f32 %v383_v34, %v377_v32  ;;  %v388_v37 = vadd.f32 %v384_v35, %v378_v33 }
 0x151   : > { %v404_v40 = vmul.f32 %v402_v38, %v387_v36  ;;  %v405_v41 = vmul.f32 %v403_v39, %v388_v37 }
 0x153   : > { %406 = vst [vmem:[%s200_s30] sm:$0xff] %v404_v40 }
 0x154   : > { %407 = vst [vmem:[%s200_s30 + $0x8] sm:$0xff] %v405_v41 }
 0x155   : > { %666 = shalt.err (!%p663_p9)
}
 0x156   : > { %s727_s11 = smov 128   ;;  %s728_s23 = smov 8  }
 0x157   : > { %542 = dma.vmem_to_hbm [thread:$0]  (%p789_p4), %s422_s4, 256, %s424_s5, %s409_s6, %s727_s11, %s727_s11, %s728_s23  }
 0x158 PF: > { %p554_p10 = scmp.ge.s32.totalorder %s721_s17, 2  ;;  %s438_s26 = sand.u32 1, %s701_s12  }
 0x159   : > { %s439_s27 = scalar_lea.sflag [#allocation4], %s438_s26 }
 0x15a   : > { %p549_p11 = pnand %p554_p10, %p796_p8 }
 0x15c   : > { %p550_p12 = pneg %p549_p11 }
 0x15e   : > { %696 = dma.done.wait (%p550_p12), %s439_s27, 256  }
 0x15f   : > { %698 = vsyncadd (%p550_p12), %s439_s27, 4294967040  ;;  %s17_s17 = sadd.s32 1, %s721_s17   ;;  %s871_s12 = smov %s705_s13 }
 0x160   : > { %p14_p13 = scmp.ge.s32.totalorder %s17_s17, 4   ;;  %s872_s13 = smov %s709_s14 }
 0x161   : > { %s873_s14 = smov %s802_s25  ;;  %s874_s15 = smov %s717_s16 }
 0x162   : > { %s875_s16 = smov %s877_s20  ;;  %16 = sbr.rel (!%p14_p13) target bundleno = 5 (0x5), region = 81 }
 0x167   :  { %445 = vsyncpa [#allocation3], 1 }
 0x168   :  { %447 = vsyncpa [#allocation3 + $0x1], 1 }
 0x169   :  { %448 = vsyncpa [#allocation4], 1 }
 0x16a   :  { %450 = vsyncpa [#allocation4 + $0x1], 1 }

// kernel: tpu_custom_call.1
= control target key start
LH: loop header
LB: loop body
LE: loop exit
PB: predicated region body
PF: predicated region fallthrough
CT: control target
= control target key end

     0   :  { %8 = vsyncpa [#allocation3], 0  ;;  %s865_s0 = inlined_call_operand.vmem [shape: f32[2,18,8], index: 0, kind: input, shape index: {}]   ;;  %s866_s1 = inlined_call_operand.hbm [shape: f32[18,512], index: 1, kind: input, shape index: {}]   ;;  %s867_s2 = inlined_call_operand.vmem [shape: f32[16,128], index: 2, kind: input, shape index: {}]   ;;  %s868_s3 = inlined_call_operand.hbm [shape: f32[2,16,128], index: 3, kind: output, shape index: {}]  }
   0x1   :  { %9 = vsyncpa [#allocation4], 0 }
   0x2   :  { %11 = vsyncpa [#allocation4 + $0x1], 0  ;;  %s749_s12 = smov 0   ;;  %s751_s13 = smov 0  }
   0x3   :  { %s753_s14 = smov 0   ;;  %s755_s15 = smov 0  }
   0x4   :  { %s757_s16 = smov 0   ;;  %s759_s17 = smov 0  }
   0x5 LB: > { %s514_s18 = sadd.s32 4294967295, %s721_s17   ;;  %s515_s19 = sadd.s32 4294967294, %s721_s17   ;;  %s721_s17 = sphi %s759_s17, %s17_s17   ;;  %s717_s16 = sphi %s757_s16, %s875_s16   ;;  %s713_s15 = sphi %s755_s15, %s874_s15   ;;  %s709_s14 = sphi %s753_s14, %s873_s14   ;;  %s705_s13 = sphi %s751_s13, %s872_s13   ;;  %s701_s12 = sphi %s749_s12, %s871_s12  }
   0x6   : > { %s29_s20 = sadd.s32 1, %s717_s16  ;;  %s106_s21 = sadd.s32 1, %s709_s14 }
   0x7   : > { %p31_p0 = scmp.ge.s32.totalorder %s29_s20, 2  ;;  %p116_p1 = scmp.ne.s32.totalorder %s709_s14, %s705_s13 }
   0x8   : > { %p117_p2 = scmp.eq.s32.totalorder %s514_s18, 1  ;;  %p122_p3 = scmp.ne.s32.totalorder %s705_s13, %s701_s12 }
   0x9   : > { %s877_s20 = smov (%p31_p0, %s29_s20), 0  ;;  %p123_p5 = scmp.eq.s32.totalorder %s515_s19, 1 }
   0xa   : > { %p789_p4 = por %p117_p2, %p116_p1  ;;  %s103_s23 = ssub.s32 %s717_s16, %s877_s20 }
   0xb   : > { %p516_p6 = scmp.ge.s32.totalorder %s721_s17, 1  ;;  %p104_p7 = scmp.eq.s32.totalorder %s103_s23, 0 }
   0xc   : > { %p796_p8 = por %p123_p5, %p122_p3  ;;  %p130_p9 = scmp.lt.s32.totalorder %s721_s17, 3 }
   0xd   : > { %s802_s25 = scalar_select %p104_p7, %s709_s14, %s106_s21  }
   0xe   : > { %p131_p10 = pnand %p516_p6, %p130_p9  ;;  %p552_p11 = scmp.eq.s32.totalorder %s514_s18, 0 }
   0xf   : > { %s141_s28 = sshll.u32 %s866_s1, 4  ;;  %s723_s29 = smov [#allocation2]   ;;  %s142_s28 = int_to_ptr.hbm [resolvable:$true] %s141_s28 }
  0x10   : > { %p544_p12 = pneg %p131_p10  ;;  %s143_s30 = sshll.u32 %s723_s29, 4  ;;  %s144_s30 = int_to_ptr.vmem [resolvable:$true] %s143_s30 }
  0x11   : > { %s724_s4 = smov 512   ;;  %s725_s5 = smov 32  }
  0x12   : > { %p545_p13 = pnand %p552_p11, %p544_p12  ;;  %173 = sbr.rel (%p131_p10) target bundleno = 344 (0x158), region = 32 }
  0x14   : > { %547 = dma.hbm_to_vmem [thread:$0]  (!%p545_p13), %s142_s28, 1536, %s144_s30, [#allocation3], %s724_s4, %s724_s4, %s725_s5  }
  0x17   : > { %692 = dma.done.wait (%p552_p11), [#allocation3], 1536  }
  0x18   : > { %694 = vsyncadd (%p552_p11), [#allocation3], 4294965760  ;;  %p201_p0 = scmp.lt.s32.totalorder %s713_s15, 1  ;;  %vm266_vm0 = vcmask 1041408   ;;  %v226_v1 = vld [vmem:[#allocation2 + $0x40] sm:$0x3] }
  0x19   : > { %v227_v2 = vld [vmem:[#allocation2 + $0x48] sm:$0x3]  ;;  %v222_v3 = vld [vmem:[#allocation2 + $0x20] sm:$0xff]  ;;  %523 = vmatpush.msk.msra.mxu0 %vm266_vm0, %v226_v1  ;;  %v228_v4 = vld [vmem:[#allocation2 + $0x50] sm:$0x3]  ;;  %vm262_vm1 = vcmask 146432  }
  0x1a   : > { %s202_s6 = scalar_select %p201_p0, %s713_s15, 1  ;;  %525 = vmatpush.msk.msra.mxu1 %vm266_vm0, %v227_v2  ;;  %v229_v5 = vld [vmem:[#allocation2 + $0x58] sm:$0x3]  ;;  %v223_v6 = vld [vmem:[#allocation2 + $0x28] sm:$0xff]  ;;  %527 = vmatpush.msk.msra.mxu2 %vm266_vm0, %v228_v4  ;;  %v224_v7 = vld [vmem:[#allocation2 + $0x30] sm:$0xff]  ;;  %v726_v17 = vmov 0.0  }
  0x1b   : > { %529 = vmatpush.msk.msra.mxu3 %vm266_vm0, %v229_v5  ;;  %v225_v8 = vld [vmem:[#allocation2 + $0x38] sm:$0xff]  ;;  %v218_v9 = vld [vmem:[#allocation2] sm:$0xff]  ;;  %293 = vmatpush.msra.mxu0 %v222_v3  ;;  %v219_v10 = vld [vmem:[#allocation2 + $0x8] sm:$0xff]  ;;  %v362_v18 = vrot.slane %v726_v17, 7  ;;  %vm361_vm2 = vcmask 1040384   ;;  %s198_s11 = sand.u32 1, %s705_s13  }
  0x1c   : > { %s537_s7 = smul.u32 24, %s202_s6  ;;  %313 = vmatpush.msra.mxu1 %v223_v6  ;;  %v220_v11 = vld [vmem:[#allocation2 + $0x10] sm:$0xff]  ;;  %v221_v12 = vld [vmem:[#allocation2 + $0x18] sm:$0xff]  ;;  %333 = vmatpush.msra.mxu2 %v224_v7  ;;  %v371_v21 = vrot.slane %v726_v17, 6  ;;  %s521_s18 = sshll.u32 %s198_s11, 4  ;;  %v381_v26 = vrot.slane %v726_v17, 5 }
  0x1d   : > { %353 = vmatpush.msra.mxu3 %v225_v8  ;;  %294 = vmatpush.msra.mxu0 %v218_v9  ;;  %s536_s19 = sshll.u32 %s713_s15, 4  ;;  %vm380_vm3 = vcmask 1042432   ;;  %v402_v38 = vld [vmem:[%s867_s2] sm:$0xff]  ;;  %v403_v39 = vld [vmem:[%s867_s2 + $0x8] sm:$0xff]  ;;  %s200_s30 = scalar_lea.vmem [#allocation5], %s521_s18 }
  0x1e   : > { %s208_s10 = scalar_lea.vmem %s865_s0, %s537_s7  ;;  %314 = vmatpush.msra.mxu1 %v219_v10  ;;  %334 = vmatpush.msra.mxu2 %v220_v11  ;;  %s420_s26 = scalar_lea.hbm %s868_s3, %s536_s19 }
  0x1f   : > { %v215_v0 = vld [vmem:[%s208_s10] sm:$0xff]  ;;  %v216_v13 = vld [vmem:[%s208_s10 + $0x8] sm:$0xff]  ;;  %354 = vmatpush.msra.mxu3 %v221_v12  ;;  %v217_v14 = vld [vmem:[%s208_s10 + $0x10] sm:$0x3]  ;;  %s421_s4 = sshll.u32 %s200_s30, 4  ;;  %s423_s5 = sshll.u32 %s420_s26, 4  ;;  %s422_s4 = int_to_ptr.vmem [resolvable:$true] %s421_s4  ;;  %s424_s5 = int_to_ptr.hbm [resolvable:$true] %s423_s5 }
  0x20   : > { %230 = vxpose.xlu0.b32.start [1/3] (short) (narrow) %v215_v0, 8  ;;  %s409_s6 = scalar_lea.sflag [#allocation4], %s198_s11  ;;  %s653_s7 = sshra.s32 %s424_s5, 4  ;;  %s654_s7 = int_to_ptr.hbm [resolvable:$true] %s653_s7 }
  0x21   : > { %s655_s8 = scalar_lea.hbm %s654_s7, 16  ;;  %s659_s18 = scalar_lea.hbm %s868_s3, 32 }
  0x22   : > { %p656_p1 = scmp.ne.s32.totalorder %s654_s7, %s655_s8  ;;  %p660_p5 = scmp.lt.s32.totalorder %s654_s7, %s868_s3 }
  0x23   : > { %p661_p6 = scmp.lt.s32.totalorder %s659_s18, %s655_s8 }
  0x24   : > { %p657_p2 = pnand %p656_p1, %p789_p4 }
  0x25   : > { %p662_p7 = por %p661_p6, %p660_p5 }
  0x26   : > { %p658_p3 = pneg %p657_p2 }
  0x28   : > { %231 = vxpose.xlu0.b32.cont [2/3] (short) (narrow) %v216_v13, 8  ;;  %p663_p9 = pnand %p662_p7, %p658_p3 }
  0x30   : > { %232 = vxpose.xlu0.b32.end [3/3] (short) (narrow) %v217_v14, 8 }
  0xc4   : > { %v246_v15 = vpop.trf.xlu0 }
  0xc5   : > { %524 = vmatmul.msk.f32.vlgmr.msra.gmra.mxu0 %vm262_vm1, %v246_v15  ;;  %526 = vmatmul.msk.f32.vlgmr.msra.gmra.mxu1 %vm262_vm1, %v246_v15 }
  0xc6   : > { %528 = vmatmul.msk.f32.vlgmr.msra.gmra.mxu2 %vm262_vm1, %v246_v15  ;;  %530 = vmatmul.msk.f32.vlgmr.msra.gmra.mxu3 %vm262_vm1, %v246_v15 }
 0x142   : > { %v316_v16 = vpop.f32.mrf.mxu1  ;;  %v296_v24 = vpop.f32.mrf.mxu0 }
 0x143   : > { %v363_v19 = vrot.slane %v316_v16, 7 }
 0x145   : > { %v364_v20 = vsel %vm361_vm2, %v362_v18, %v363_v19  ;;  %v365_v29 = vsel %vm361_vm2, %v363_v19, %v362_v18 }
 0x146   : > { %v368_v28 = vadd.f32 %v364_v20, %v296_v24 }
 0x149   : > { %v336_v22 = vpop.f32.mrf.mxu2  ;;  %v356_v23 = vpop.f32.mrf.mxu3 }
 0x14a   : > { %v372_v25 = vrot.slane %v336_v22, 6  ;;  %v382_v27 = vrot.slane %v356_v23, 5 }
 0x14c   : > { %v373_v30 = vsel %vm266_vm0, %v371_v21, %v372_v25  ;;  %v374_v31 = vsel %vm266_vm0, %v372_v25, %v371_v21  ;;  %v383_v34 = vsel %vm380_vm3, %v381_v26, %v382_v27  ;;  %v384_v35 = vsel %vm380_vm3, %v382_v27, %v381_v26 }
 0x14d   : > { %v377_v32 = vadd.f32 %v373_v30, %v368_v28  ;;  %v378_v33 = vadd.f32 %v374_v31, %v365_v29 }
 0x14f   : > { %v387_v36 = vadd.f32 %v383_v34, %v377_v32  ;;  %v388_v37 = vadd.f32 %v384_v35, %v378_v33 }
 0x151   : > { %v404_v40 = vmul.f32 %v402_v38, %v387_v36  ;;  %v405_v41 = vmul.f32 %v403_v39, %v388_v37 }
 0x153   : > { %406 = vst [vmem:[%s200_s30] sm:$0xff] %v404_v40 }
 0x154   : > { %407 = vst [vmem:[%s200_s30 + $0x8] sm:$0xff] %v405_v41 }
 0x155   : > { %666 = shalt.err (!%p663_p9)
}
 0x156   : > { %s727_s11 = smov 128   ;;  %s728_s23 = smov 8  }
 0x157   : > { %542 = dma.vmem_to_hbm [thread:$0]  (%p789_p4), %s422_s4, 256, %s424_s5, %s409_s6, %s727_s11, %s727_s11, %s728_s23  }
 0x158 PF: > { %p554_p10 = scmp.ge.s32.totalorder %s721_s17, 2  ;;  %s438_s26 = sand.u32 1, %s701_s12  }
 0x159   : > { %s439_s27 = scalar_lea.sflag [#allocation4], %s438_s26 }
 0x15a   : > { %p549_p11 = pnand %p554_p10, %p796_p8 }
 0x15c   : > { %p550_p12 = pneg %p549_p11 }
 0x15e   : > { %696 = dma.done.wait (%p550_p12), %s439_s27, 256  }
 0x15f   : > { %698 = vsyncadd (%p550_p12), %s439_s27, 4294967040  ;;  %s17_s17 = sadd.s32 1, %s721_s17   ;;  %s871_s12 = smov %s705_s13 }
 0x160   : > { %p14_p13 = scmp.ge.s32.totalorder %s17_s17, 4   ;;  %s872_s13 = smov %s709_s14 }
 0x161   : > { %s873_s14 = smov %s802_s25  ;;  %s874_s15 = smov %s717_s16 }
 0x162   : > { %s875_s16 = smov %s877_s20  ;;  %16 = sbr.rel (!%p14_p13) target bundleno = 5 (0x5), region = 81 }
 0x167   :  { %445 = vsyncpa [#allocation3], 1 }
 0x168   :  { %447 = vsyncpa [#allocation3 + $0x1], 1 }
 0x169   :  { %448 = vsyncpa [#allocation4], 1 }
 0x16a   :  { %450 = vsyncpa [#allocation4 + $0x1], 1 }

</bundles_post_ra>
